<compile_context>
chip_gen: v6e
topology: v6e:2x2x1
jax: 0.10.0
libtpu: 0.0.40
codegen_flags: <defaults>
</compile_context>

<pallas_src>
import jax
import jax.numpy as jnp
from jax.experimental import pallas as pl
from jax.experimental.pallas import tpu as pltpu


def _round_up(n: int, m: int) -> int:
    return ((n + m - 1) // m) * m


# ----------------------------------------------------------------------------
# Kernels
# ----------------------------------------------------------------------------

def pgnet_small_kernel(x_ref, w1_ref, b1_ref, w2t_ref, b2_ref, out_ref):
    """Tiny-batch path: unpadded shapes, pure VPU (no MXU, no masks needed).

    x: (B, obs); w1: (obs, hid); b1: (1, hid); w2t: (act, hid); b2: (1, act).
    """
    x = x_ref[...]
    obs = x_ref.shape[1]
    n_act = w2t_ref.shape[0]

    # Layer 1 as `obs` broadcast multiply-adds (obs is tiny, e.g. 4).
    h = x[:, 0:1] * w1_ref[0:1, :]
    for k in range(1, obs):
        h = h + x[:, k:k + 1] * w1_ref[k:k + 1, :]
    h = jnp.maximum(h + b1_ref[...], 0.0)                     # (B, hid)

    # Layer 2 as `n_act` lane reductions (n_act is tiny, e.g. 2).
    cols = []
    for a in range(n_act):
        ya = jnp.sum(h * w2t_ref[a:a + 1, :], axis=-1, keepdims=True)   # (B, 1)
        cols.append(ya + b2_ref[:, a:a + 1])
    out_ref[...] = jnp.concatenate(cols, axis=-1).astype(out_ref.dtype)


def pgnet_fm_kernel(xt_ref, w1t_ref, b1_ref, w2t_ref, b2_ref, out_ref):
    """Feature-major batched path: batch on the lane axis.

    xt: (obs_p, Bt); w1t: (hid_p, obs_p); b1: (hid_p, 1);
    w2t: (act_p, hid_p); b2: (act_p, 1); out: (act_p, Bt).
    """
    h = jnp.dot(w1t_ref[...], xt_ref[...], preferred_element_type=jnp.float32)
    h = jnp.maximum(h + b1_ref[...], 0.0)                      # (hid_p, Bt)
    y = jnp.dot(w2t_ref[...], h, preferred_element_type=jnp.float32)
    out_ref[...] = (y + b2_ref[...]).astype(out_ref.dtype)     # (act_p, Bt)


# ----------------------------------------------------------------------------
# Wrappers
# ----------------------------------------------------------------------------

def prepare_params(w1, b1, w2, b2):
    """Pad / transpose the weights ONCE (hoisted out of the per-call hot path).

    w1: (obs, hid); b1: (1, hid) or (hid,); w2: (hid, act); b2: (1, act) or (act,).
    Matches PyTorch nn.Linear semantics y = x @ W.T + b with weights stored
    pre-transposed as (in_features, out_features).
    """
    obs, hid = w1.shape
    act = w2.shape[1]
    b1 = jnp.asarray(b1, jnp.float32).reshape(1, hid)
    b2 = jnp.asarray(b2, jnp.float32).reshape(1, act)

    obs_p = _round_up(max(obs, 8), 8)
    hid_p = _round_up(max(hid, 8), 8)
    act_p = _round_up(max(act, 8), 8)

    return {
        # Raw (unpadded) params: small-batch / per-step inference path.
        "w1": jnp.asarray(w1, jnp.float32),
        "b1": b1,
        "w2t": jnp.asarray(w2, jnp.float32).T,       # (act, hid)
        "b2": b2,
        # Padded, feature-major params: batched-rollout path.
        "w1t_p": jnp.zeros((hid_p, obs_p), jnp.float32).at[:hid, :obs].set(w1.T),
        "b1_p": jnp.zeros((hid_p, 1), jnp.float32).at[:hid, :].set(b1.T),
        "w2t_p": jnp.zeros((act_p, hid_p), jnp.float32).at[:act, :hid].set(w2.T),
        "b2_p": jnp.zeros((act_p, 1), jnp.float32).at[:act, :].set(b2.T),
    }


def pgnet_forward(x, params, *, batch_tile=1024, small_batch_threshold=256):
    """x: (B, obs_size) f32 -> logits (B, n_action) f32."""
    B, obs = x.shape
    n_action = params["w2t"].shape[0]

    if B <= small_batch_threshold:
        # No grid, no padding, no post-slice: whole unpadded arrays in VMEM.
        vmem = pltpu.MemorySpace.VMEM
        return pl.pallas_call(
            pgnet_small_kernel,
            out_shape=jax.ShapeDtypeStruct((B, n_action), jnp.float32),
            in_specs=[pl.BlockSpec(memory_space=vmem)] * 5,
            out_specs=pl.BlockSpec(memory_space=vmem),
        )(x, params["w1"], params["b1"], params["w2t"], params["b2"])

    # ---- Batched-rollout path: feature-major, grid over the batch (lane) axis.
    w1t_p, b1_p = params["w1t_p"], params["b1_p"]
    w2t_p, b2_p = params["w2t_p"], params["b2_p"]
    hid_p, obs_p = w1t_p.shape
    act_p = w2t_p.shape[0]

    # Cap the tile so the "parallel" axis has >= 2 steps (v7x: both TensorCores
    # get work).  Tiles this size keep x/out double buffers at a few hundred
    # KiB -> far below scoped VMEM on v5e/v6e/v7x, so no vmem_limit override.
    bt = max(128, min(batch_tile, _round_up(pl.cdiv(B, 2), 128)))
    Bp = _round_up(B, bt)

    # Only the data (x) is padded per call; weights were padded once above.
    xt_p = jnp.zeros((obs_p, Bp), jnp.float32).at[:obs, :B].set(x.T)

    out = pl.pallas_call(
        pgnet_fm_kernel,
        out_shape=jax.ShapeDtypeStruct((act_p, Bp), jnp.float32),
        grid=(Bp // bt,),
        in_specs=[
            pl.BlockSpec((obs_p, bt), lambda i: (0, i)),      # xT: streams
            pl.BlockSpec((hid_p, obs_p), lambda i: (0, 0)),   # weights: VMEM-resident
            pl.BlockSpec((hid_p, 1), lambda i: (0, 0)),
            pl.BlockSpec((act_p, hid_p), lambda i: (0, 0)),
            pl.BlockSpec((act_p, 1), lambda i: (0, 0)),
        ],
        out_specs=pl.BlockSpec((act_p, bt), lambda i: (0, i)),
        compiler_params=pltpu.CompilerParams(
            dimension_semantics=("parallel",)),
    )(xt_p, w1t_p, b1_p, w2t_p, b2_p)
    return out[:n_action, :B].T


# ----------------------------------------------------------------------------
# Init + reference + test
# ----------------------------------------------------------------------------

def init_params(key, obs_size, hidden_size, n_action):
    """Deterministic synthetic init (uniform, PyTorch Linear default bounds)."""
    k1, k2, k3, k4 = jax.random.split(key, 4)
    bound1 = 1.0 / jnp.sqrt(obs_size)
    bound2 = 1.0 / jnp.sqrt(hidden_size)
    w1 = jax.random.uniform(k1, (obs_size, hidden_size), jnp.float32, -bound1, bound1)
    b1 = jax.random.uniform(k2, (1, hidden_size), jnp.float32, -bound1, bound1)
    w2 = jax.random.uniform(k3, (hidden_size, n_action), jnp.float32, -bound2, bound2)
    b2 = jax.random.uniform(k4, (1, n_action), jnp.float32, -bound2, bound2)
    return w1, b1, w2, b2


def _ref_forward(x, w1, b1, w2, b2):
    return jnp.maximum(x @ w1 + b1, 0.0) @ w2 + b2


if __name__ == "__main__":
    # CartPole-like sizes: obs_size=4, hidden=32, n_action=2, batch=8.
    obs_size, hidden_size, n_action, batch = 4, 32, 2, 8
    key = jax.random.PRNGKey(0)
    kx, kb, kp = jax.random.split(key, 3)
    w1, b1, w2, b2 = init_params(kp, obs_size, hidden_size, n_action)

    params = prepare_params(w1, b1, w2, b2)   # padded ONCE, outside the hot path
    fwd = jax.jit(pgnet_forward)

    # Small-batch (per-step inference) path: no grid, no padding ops.
    x = jax.random.normal(kx, (batch, obs_size), jnp.float32)
    out = jax.block_until_ready(fwd(x, params))
    ref = _ref_forward(x, w1, b1, w2, b2)
    assert out.shape == (batch, n_action)
    assert jnp.allclose(out, ref, atol=1e-5), "small-batch mismatch vs reference"

    # Batched-rollout path: feature-major, grid over batch lanes, resident weights.
    big_batch = 512
    xb = jax.random.normal(kb, (big_batch, obs_size), jnp.float32)
    outb = jax.block_until_ready(fwd(xb, params))
    refb = _ref_forward(xb, w1, b1, w2, b2)
    assert outb.shape == (big_batch, n_action)
    assert jnp.allclose(outb, refb, atol=1e-4), "batched mismatch vs reference"

    print("KERNEL_OK")
</pallas_src>

<mosaic_0001>
module attributes {stable_mosaic.version = 11 : i64} {
  func.func @pgnet_small_kernel(%arg0: memref<8x4xf32, #tpu.memory_space<vmem>>, %arg1: memref<4x32xf32, #tpu.memory_space<vmem>>, %arg2: memref<1x32xf32, #tpu.memory_space<vmem>>, %arg3: memref<2x32xf32, #tpu.memory_space<vmem>>, %arg4: memref<1x2xf32, #tpu.memory_space<vmem>>, %arg5: memref<8x2xf32, #tpu.memory_space<vmem>>) attributes {dimension_semantics = [], scalar_prefetch = 0 : i64, scratch_operands = 0 : i64, tpu.core_type = #tpu.core_type<tc>} {
    %c0 = arith.constant 0 : index
    %c0_0 = arith.constant 0 : index
    %0 = vector.load %arg0[%c0, %c0_0] : memref<8x4xf32, #tpu.memory_space<vmem>>, vector<8x4xf32>
    %1 = vector.extract_strided_slice %0 {offsets = [0, 0], sizes = [8, 1], strides = [1, 1]} : vector<8x4xf32> to vector<8x1xf32>
    %c0_1 = arith.constant 0 : index
    %c0_2 = arith.constant 0 : index
    %2 = vector.load %arg1[%c0_1, %c0_2] : memref<4x32xf32, #tpu.memory_space<vmem>>, vector<1x32xf32>
    %3 = vector.broadcast %1 : vector<8x1xf32> to vector<8x32xf32>
    %4 = vector.broadcast %2 : vector<1x32xf32> to vector<8x32xf32>
    %5 = arith.mulf %3, %4 : vector<8x32xf32>
    %6 = vector.extract_strided_slice %0 {offsets = [0, 1], sizes = [8, 1], strides = [1, 1]} : vector<8x4xf32> to vector<8x1xf32>
    %c1 = arith.constant 1 : index
    %c0_3 = arith.constant 0 : index
    %7 = vector.load %arg1[%c1, %c0_3] : memref<4x32xf32, #tpu.memory_space<vmem>>, vector<1x32xf32>
    %8 = vector.broadcast %6 : vector<8x1xf32> to vector<8x32xf32>
    %9 = vector.broadcast %7 : vector<1x32xf32> to vector<8x32xf32>
    %10 = arith.mulf %8, %9 : vector<8x32xf32>
    %11 = arith.addf %5, %10 : vector<8x32xf32>
    %12 = vector.extract_strided_slice %0 {offsets = [0, 2], sizes = [8, 1], strides = [1, 1]} : vector<8x4xf32> to vector<8x1xf32>
    %c2 = arith.constant 2 : index
    %c0_4 = arith.constant 0 : index
    %13 = vector.load %arg1[%c2, %c0_4] : memref<4x32xf32, #tpu.memory_space<vmem>>, vector<1x32xf32>
    %14 = vector.broadcast %12 : vector<8x1xf32> to vector<8x32xf32>
    %15 = vector.broadcast %13 : vector<1x32xf32> to vector<8x32xf32>
    %16 = arith.mulf %14, %15 : vector<8x32xf32>
    %17 = arith.addf %11, %16 : vector<8x32xf32>
    %18 = vector.extract_strided_slice %0 {offsets = [0, 3], sizes = [8, 1], strides = [1, 1]} : vector<8x4xf32> to vector<8x1xf32>
    %c3 = arith.constant 3 : index
    %c0_5 = arith.constant 0 : index
    %19 = vector.load %arg1[%c3, %c0_5] : memref<4x32xf32, #tpu.memory_space<vmem>>, vector<1x32xf32>
    %20 = vector.broadcast %18 : vector<8x1xf32> to vector<8x32xf32>
    %21 = vector.broadcast %19 : vector<1x32xf32> to vector<8x32xf32>
    %22 = arith.mulf %20, %21 : vector<8x32xf32>
    %23 = arith.addf %17, %22 : vector<8x32xf32>
    %c0_6 = arith.constant 0 : index
    %c0_7 = arith.constant 0 : index
    %24 = vector.load %arg2[%c0_6, %c0_7] : memref<1x32xf32, #tpu.memory_space<vmem>>, vector<1x32xf32>
    %25 = vector.broadcast %24 : vector<1x32xf32> to vector<8x32xf32>
    %26 = arith.addf %23, %25 : vector<8x32xf32>
    %cst = arith.constant 0.000000e+00 : f32
    %27 = vector.broadcast %cst : f32 to vector<8x32xf32>
    %28 = arith.maximumf %26, %27 : vector<8x32xf32>
    %c0_8 = arith.constant 0 : index
    %c0_9 = arith.constant 0 : index
    %29 = vector.load %arg3[%c0_8, %c0_9] : memref<2x32xf32, #tpu.memory_space<vmem>>, vector<1x32xf32>
    %30 = vector.broadcast %29 : vector<1x32xf32> to vector<8x32xf32>
    %31 = arith.mulf %28, %30 : vector<8x32xf32>
    %cst_10 = arith.constant dense<0.000000e+00> : vector<8xf32>
    %32 = vector.multi_reduction <add>, %31, %cst_10 [1] : vector<8x32xf32> to vector<8xf32>
    %33 = vector.shape_cast %32 : vector<8xf32> to vector<8x1xf32>
    %c0_11 = arith.constant 0 : index
    %c0_12 = arith.constant 0 : index
    %34 = vector.load %arg4[%c0_11, %c0_12] : memref<1x2xf32, #tpu.memory_space<vmem>>, vector<1x1xf32>
    %35 = vector.broadcast %34 : vector<1x1xf32> to vector<8x1xf32>
    %36 = arith.addf %33, %35 : vector<8x1xf32>
    %c1_13 = arith.constant 1 : index
    %c0_14 = arith.constant 0 : index
    %37 = vector.load %arg3[%c1_13, %c0_14] : memref<2x32xf32, #tpu.memory_space<vmem>>, vector<1x32xf32>
    %38 = vector.broadcast %37 : vector<1x32xf32> to vector<8x32xf32>
    %39 = arith.mulf %28, %38 : vector<8x32xf32>
    %cst_15 = arith.constant dense<0.000000e+00> : vector<8xf32>
    %40 = vector.multi_reduction <add>, %39, %cst_15 [1] : vector<8x32xf32> to vector<8xf32>
    %41 = vector.shape_cast %40 : vector<8xf32> to vector<8x1xf32>
    %c0_16 = arith.constant 0 : index
    %c1_17 = arith.constant 1 : index
    %42 = vector.load %arg4[%c0_16, %c1_17] : memref<1x2xf32, #tpu.memory_space<vmem>>, vector<1x1xf32>
    %43 = vector.broadcast %42 : vector<1x1xf32> to vector<8x1xf32>
    %44 = arith.addf %41, %43 : vector<8x1xf32>
    %45 = tpu.concatenate %36, %44 in 1 : vector<8x1xf32>, vector<8x1xf32> -> vector<8x2xf32>
    %c0_18 = arith.constant 0 : index
    %c0_19 = arith.constant 0 : index
    %46 = vector.load %arg5[%c0_18, %c0_19] : memref<8x2xf32, #tpu.memory_space<vmem>>, vector<8x2xf32>
    tpu.vector_store %arg5[%c0_18, %c0_19], %45 {strides = array<i32>} : memref<8x2xf32, #tpu.memory_space<vmem>>, vector<8x2xf32>,
    return
  }
}

</mosaic_0001>

<bundles_post_ra>
// kernel: pgnet_forward.1
= control target key start
LH: loop header
LB: loop body
LE: loop exit
PB: predicated region body
PF: predicated region fallthrough
CT: control target
= control target key end

     0   :  { %v127_v0 = vmov 0   ;;  %v128_v2 = vmov 2   ;;  %v129_v3 = vmov 1   ;;  %v130_v4 = vmov 3   ;;  %s191_s0 = inlined_call_operand.vmem [shape: f32[8,4], index: 0, kind: input, shape index: {}]   ;;  %s192_s1 = inlined_call_operand.vmem [shape: f32[4,32], index: 1, kind: input, shape index: {}]   ;;  %s193_s2 = inlined_call_operand.vmem [shape: f32[1,32], index: 2, kind: input, shape index: {}]   ;;  %s194_s3 = inlined_call_operand.vmem [shape: f32[2,32], index: 3, kind: input, shape index: {}]   ;;  %s195_s4 = inlined_call_operand.vmem [shape: f32[1,2], index: 4, kind: input, shape index: {}]   ;;  %s196_s5 = inlined_call_operand.vmem [shape: f32[8,2], index: 5, kind: output, shape index: {}]  }
   0x1   :  { %122 = vset.pattern.permute.xlu0 %v127_v0  ;;  %v20_v1 = vld [vmem:[%s191_s0] sm:$0xff]  ;;  %124 = vset.pattern.permute.xlu1 %v128_v2  ;;  %vm80_vm0 = vcmask 261120   ;;  %vm102_vm1 = vcmask 7168   ;;  %vm104_vm2 = vcmask 15360  }
   0x2   :  { %24 = vperm.xlu0 %122, %v20_v1   ;;  %45 = vperm.xlu1 %124, %v20_v1   ;;  %v110_v7 = vld [vmem:[%s192_s1] ss:$0 sm:$0xff]  ;;  %v111_v8 = vld [vmem:[%s192_s1 + $0x1] ss:$0 sm:$0xff]  ;;  %v112_v9 = vld [vmem:[%s192_s1 + $0x2] ss:$0 sm:$0xff] }
   0x3   :  { %v113_v11 = vld [vmem:[%s192_s1 + $0x3] ss:$0 sm:$0xff]  ;;  %v114_v19 = vld [vmem:[%s193_s2] ss:$0 sm:$0xff]  ;;  %v117_v22 = vld [vmem:[%s194_s3 + $0x1] ss:$0 sm:$0xff] }
   0x4   :  { %v115_v23 = vld [vmem:[%s194_s3] ss:$0 sm:$0xff] }
   0x5   :  { %v116_v29 = vld [vmem:[%s195_s4] ss:$0 sm:$0xff] }
   0x6   :  { %123 = vset.pattern.permute.xlu0 %v129_v3  ;;  %125 = vset.pattern.permute.xlu1 %v130_v4 }
   0x7   :  { %34 = vperm.xlu0 %123, %v20_v1   ;;  %56 = vperm.xlu1 %125, %v20_v1  }
   0xb   :  { %126 = vset.pattern.permute.xlu0 %v130_v4 }
  0x7d   :  { %v25_v5 = vpop.permute.xlu0 %24  ;;  %v46_v6 = vpop.permute.xlu1 %45 }
  0x7e   :  { %v31_v13 = vmul.f32 %v110_v7, %v25_v5  ;;  %v52_v15 = vmul.f32 %v112_v9, %v46_v6 }
  0x82   :  { %v35_v10 = vpop.permute.xlu0 %34  ;;  %v57_v12 = vpop.permute.xlu1 %56 }
  0x83   :  { %v41_v14 = vmul.f32 %v111_v8, %v35_v10  ;;  %v63_v17 = vmul.f32 %v113_v11, %v57_v12 }
  0x85   :  { %v42_v16 = vadd.f32 %v41_v14, %v31_v13 }
  0x87   :  { %v53_v18 = vadd.f32 %v52_v15, %v42_v16 }
  0x89   :  { %v64_v20 = vadd.f32 %v63_v17, %v53_v18 }
  0x8b   :  { %v72_v21 = vadd.f32 %v114_v19, %v64_v20 }
  0x8d   :  { %v73_v24 = vmax.f32 %v72_v21, 0.0 }
  0x8f   :  { %v97_v25 = vmul.f32 %v117_v22, %v73_v24  ;;  %v79_v26 = vmul.f32 %v115_v23, %v73_v24 }
  0x91   :  { %v98_v27 = vsel %vm80_vm0, %v97_v25, 0.0  ;;  %v81_v28 = vsel %vm80_vm0, %v79_v26, 0.0 }
  0x92   :  { %99 = vadd.xlane.f32.xlu0 %v98_v27  ;;  %82 = vadd.xlane.f32.xlu1 %v81_v28 }
 0x11b   :  { %v100_v30 = vpop.xlane.xlu0 %99  ;;  %v83_v31 = vpop.xlane.xlu1 %82 }
 0x11c   :  { %v101_v32 = vadd.f32 %v116_v29, %v100_v30  ;;  %v91_v33 = vadd.f32 %v116_v29, %v83_v31 }
 0x11e   :  { %v103_v34 = vsel %vm102_vm1, %v91_v33, %v101_v32 }
 0x11f   :  { %105 = vst.msk [vmem:[%s196_s5] sm:$0xff] %vm104_vm2, %v103_v34 }

</bundles_post_ra>
